<compile_context>
chip_gen: v5e
topology: v5e:2x2
jax: 0.10.0
libtpu: 0.0.40
codegen_flags: <defaults>
</compile_context>

<pallas_src>
import functools
import math

import jax
import jax.numpy as jnp
from jax.experimental import pallas as pl
from jax.experimental.pallas import tpu as pltpu


BN_EPS = 1e-5

CONFIG = dict(
    seed=0,
    quantiles=[0.1, 0.5, 0.9],                       # -> output dim = 3 + 1 = 4
    categorical_features=["cat_a", "cat_b"],
    multi_label_categorical_features=["bag_c"],
    num_embeddings=[10, 12, 16],
    embedding_dims=[4, 4, 8],                        # total_embedding_dim = 16
    num_continuous_features=6,
    continuous_layers=[32, 16],                      # -> [6, 32, 16]
    categorical_layers=[32, 16],                     # -> [16, 32, 16]
    final_layers=[32, 16],                           # -> [32, 32, 16] (+ final -> 4)
    dropout=0.1,                                     # identity in eval mode
)


def _round_up(x, m):
    return (x + m - 1) // m * m


def _cdiv(a, b):
    return -(-a // b)


# ---------------------------------------------------------------------------
# Fused Pallas kernel: whole QuantileNet forward for one batch tile.
# ---------------------------------------------------------------------------
def _fused_forward_kernel(cont_ref, idx_ref, w1c_ref, w1e_ref, w2_ref, w3_ref,
                          w4_ref, w5_ref, b_ref, o_ref):
    dot = functools.partial(jnp.dot, preferred_element_type=jnp.float32)
    tile_b = cont_ref.shape[0]
    n_emb = w1e_ref.shape[0]            # sum of all embedding-table sizes (one-hot lanes)
    n_bag = idx_ref.shape[1] - 2        # bag length L
    wdt = w1c_ref.dtype                 # bf16 matmul operand dtype

    # ---- embeddings as one-hot / masked-mean count matrix (tables folded into w1e).
    # idx columns: [cat_a, cat_b + n_a, bag...(+n_a+n_b, padding entries marked -1)]
    idx = idx_ref[...]                                              # (tile_b, 2+L) int32
    lanes = jax.lax.broadcasted_iota(jnp.int32, (tile_b, n_emb), 1)
    onehot = jnp.logical_or(lanes == idx[:, 0:1],
                            lanes == idx[:, 1:2]).astype(jnp.float32)

    bag_hits = jnp.zeros((tile_b, n_emb), jnp.float32)
    bag_count = jnp.zeros((tile_b, 1), jnp.float32)
    for l in range(n_bag):                                          # static, L is tiny
        bl = idx[:, 2 + l:3 + l]                                    # (tile_b, 1)
        bag_hits = bag_hits + (lanes == bl).astype(jnp.float32)     # -1 never matches
        bag_count = bag_count + (bl >= 0).astype(jnp.float32)
    # EmbeddingBag(mode='mean', padding_idx=0): mean over non-padding; empty bag -> 0.
    inv = jnp.where(bag_count > 0.0, 1.0 / jnp.maximum(bag_count, 1.0), 0.0)
    emb_onehot = (onehot + bag_hits * inv).astype(wdt)              # (tile_b, n_emb)

    # ---- layer 1: cont + cat branches fused via block-structured W1 (BN folded).
    h = (dot(cont_ref[...].astype(wdt), w1c_ref[...])
         + dot(emb_onehot, w1e_ref[...])
         + b_ref[0:1, :])
    h = jnp.maximum(h, 0.0)                                         # (tile_b, 64)

    # ---- layer 2: block-diagonal -> hidden state is [cont_out | cat_out].
    h = jnp.maximum(dot(h.astype(wdt), w2_ref[...])
                    + b_ref[1:2, :w2_ref.shape[1]], 0.0)            # (tile_b, 32)

    # ---- final MLP (the concat is already materialized by construction).
    h = jnp.maximum(dot(h.astype(wdt), w3_ref[...])
                    + b_ref[2:3, :w3_ref.shape[1]], 0.0)            # (tile_b, 32)
    h = jnp.maximum(dot(h.astype(wdt), w4_ref[...])
                    + b_ref[3:4, :w4_ref.shape[1]], 0.0)            # (tile_b, 16)
    # last Linear: no ReLU, no BN; narrow (8-lane) output block.
    o_ref[...] = (dot(h.astype(wdt), w5_ref[...])
                  + b_ref[4:5, :o_ref.shape[1]]).astype(o_ref.dtype)


def fused_forward(params, cont, idx, *, max_tile_b=2048, min_grid_steps=4):
    """Single pallas_call running the whole network over a batch-tiled grid."""
    w1c, w1e, w2, w3, w4, w5, biases = (params[k] for k in
                                        ("w1c", "w1e", "w2", "w3", "w4", "w5", "biases"))
    num_out = w5.shape[1]
    out_w = max(8, _round_up(num_out, 8))
    w5p = jnp.pad(w5, ((0, 0), (0, out_w - num_out))) if out_w != num_out else w5
    weights = (w1c, w1e, w2, w3, w4, w5p, biases)

    B = cont.shape[0]
    # >= min_grid_steps grid steps when possible (v7x megacore), <1 tile of row padding.
    tile_b = max(8, min(max_tile_b, _round_up(_cdiv(B, min_grid_steps), 8)))
    steps = _cdiv(B, tile_b)
    bp = steps * tile_b
    if bp != B:
        cont = jnp.pad(cont, ((0, bp - B), (0, 0)))
        idx = jnp.pad(idx, ((0, bp - B), (0, 0)), constant_values=-1)

    act_specs = [pl.BlockSpec((tile_b, cont.shape[1]), lambda i: (i, 0)),
                 pl.BlockSpec((tile_b, idx.shape[1]), lambda i: (i, 0))]
    # Weights/biases: full-array blocks, constant block index -> stay VMEM-resident.
    w_specs = [pl.BlockSpec(w.shape, lambda i: (0, 0)) for w in weights]

    mm = (w1c, w1e, w2, w3, w4, w5p)
    flops = 2 * bp * sum(int(w.shape[0]) * int(w.shape[1]) for w in mm)
    bytes_accessed = int(cont.size * 4 + idx.size * 4
                         + sum(int(w.size) * w.dtype.itemsize for w in weights)
                         + bp * out_w * 4)

    out = pl.pallas_call(
        _fused_forward_kernel,
        out_shape=jax.ShapeDtypeStruct((bp, out_w), jnp.float32),
        grid=(steps,),
        in_specs=act_specs + w_specs,
        out_specs=pl.BlockSpec((tile_b, out_w), lambda i: (i, 0)),
        compiler_params=pltpu.CompilerParams(dimension_semantics=("parallel",)),
        cost_estimate=pl.CostEstimate(flops=flops, transcendentals=0,
                                      bytes_accessed=bytes_accessed),
    )(cont, idx, *weights)
    return out[:B, :num_out]


# ---------------------------------------------------------------------------
# Parameter construction (deterministic, synthetic -- mirrors QuantileNet.__init__)
# ---------------------------------------------------------------------------
def _init_linear(key, din, dout):
    kw, kb = jax.random.split(key)
    bound = 1.0 / math.sqrt(din)
    w = jax.random.uniform(kw, (din, dout), jnp.float32, -bound, bound)
    b = jax.random.uniform(kb, (dout,), jnp.float32, -bound, bound)
    return w, b


def _folded_hidden_layers(key, sizes):
    """Linear -> ReLU -> BN(eval) -> Dropout(id); BN scale folded into W, b.

    At init BN has mean=0, var=1, gamma=1, beta=0, so BN(z) = z * s with
    s = 1/sqrt(1+eps) > 0, which commutes with ReLU.
    """
    s = 1.0 / math.sqrt(1.0 + BN_EPS)
    keys = jax.random.split(key, len(sizes) - 1)
    layers = []
    for i in range(len(sizes) - 1):
        w, b = _init_linear(keys[i], sizes[i], sizes[i + 1])
        layers.append((w * s, b * s))
    return layers


def init_params(config):
    key = jax.random.PRNGKey(config["seed"])
    k_emb, k_cont, k_cat, k_fin = jax.random.split(key, 4)

    # Embedding tables (padding_idx=0 row zeroed, as nn.Embedding / nn.EmbeddingBag do).
    emb_keys = jax.random.split(k_emb, len(config["num_embeddings"]))
    tables = []
    for k, n, d in zip(emb_keys, config["num_embeddings"], config["embedding_dims"]):
        tbl = jax.random.normal(k, (n, d), jnp.float32).at[0].set(0.0)
        tables.append(tbl)

    cont_sizes = [config["num_continuous_features"]] + list(config["continuous_layers"])
    total_emb_dim = sum(config["embedding_dims"])
    cat_sizes = [total_emb_dim] + list(config["categorical_layers"])
    final_sizes = [cat_sizes[-1] + cont_sizes[-1]] + list(config["final_layers"])
    num_out = len(config["quantiles"]) + 1

    cont_layers = _folded_hidden_layers(k_cont, cont_sizes)
    cat_layers = _folded_hidden_layers(k_cat, cat_sizes)
    k_fin_h, k_fin_last = jax.random.split(k_fin)
    fin_layers = _folded_hidden_layers(k_fin_h, final_sizes)
    w_last, b_last = _init_linear(k_fin_last, final_sizes[-1], num_out)  # plain Linear

    assert len(cont_layers) == 2 and len(cat_layers) == 2 and len(fin_layers) == 2

    (c1w, c1b), (c2w, c2b) = cont_layers
    (g1w, g1b), (g2w, g2b) = cat_layers
    (f1w, f1b), (f2w, f2b) = fin_layers
    d1c, d2c = cont_sizes[1], cont_sizes[2]          # 32, 16
    d1g, d2g = cat_sizes[1], cat_sizes[2]            # 32, 16
    d_a, d_b, _ = config["embedding_dims"]
    n_a, n_b, n_c = config["num_embeddings"]

    # Layer 1 block matrix: continuous rows -> cols [0, d1c); embedding-table rows
    # (folded through the first categorical Linear) -> cols [d1c, d1c+d1g).
    w1c = jnp.zeros((cont_sizes[0], d1c + d1g), jnp.float32).at[:, :d1c].set(c1w)
    m_a = tables[0] @ g1w[:d_a]                      # (n_a, d1g)
    m_b = tables[1] @ g1w[d_a:d_a + d_b]             # (n_b, d1g)
    m_c = tables[2] @ g1w[d_a + d_b:]                # (n_c, d1g)
    w1e = jnp.zeros((n_a + n_b + n_c, d1c + d1g), jnp.float32)
    w1e = w1e.at[:n_a, d1c:].set(m_a)
    w1e = w1e.at[n_a:n_a + n_b, d1c:].set(m_b)
    w1e = w1e.at[n_a + n_b:, d1c:].set(m_c)
    b1 = jnp.concatenate([c1b, g1b])

    # Layer 2 block-diagonal: produces [cont_out | cat_out].
    w2 = jnp.zeros((d1c + d1g, d2c + d2g), jnp.float32)
    w2 = w2.at[:d1c, :d2c].set(c2w).at[d1c:, d2c:].set(g2w)
    b2 = jnp.concatenate([c2b, g2b])

    # Final layer 1 expects [cat_out | cont_out] -> reorder its rows for [cont | cat].
    w3 = jnp.concatenate([f1w[d2g:], f1w[:d2g]], axis=0)
    b3 = f1b
    w4, b4 = f2w, f2b
    w5, b5 = w_last, b_last

    # Pack all biases into one f32 (5, width) matrix (rows zero-padded to max width).
    bw = d1c + d1g
    assert bw >= max(b2.shape[0], b3.shape[0], b4.shape[0], num_out)
    biases = jnp.stack([jnp.pad(v, (0, bw - v.shape[0]))
                        for v in (b1, b2, b3, b4, b5)])

    bf16 = jnp.bfloat16
    return dict(w1c=w1c.astype(bf16), w1e=w1e.astype(bf16), w2=w2.astype(bf16),
                w3=w3.astype(bf16), w4=w4.astype(bf16), w5=w5.astype(bf16),
                biases=biases.astype(jnp.float32))


# ---------------------------------------------------------------------------
# Forward pass: index packing in the wrapper, everything else in one Pallas call.
# ---------------------------------------------------------------------------
def quantile_net_forward(params, cont, cat_a, cat_b, bag_c, *, num_embeddings):
    n_a, n_b, _ = num_embeddings
    cont = cont.astype(jnp.float32)
    cat_a = cat_a.astype(jnp.int32)[:, None]
    cat_b = cat_b.astype(jnp.int32)[:, None] + n_a
    # Bag indices shifted into the shared one-hot lane space; padding entries (0) are
    # remapped to -1 so they never match a lane and are excluded from the mean count.
    bag = jnp.where(bag_c == 0, -1, bag_c.astype(jnp.int32) + (n_a + n_b))
    idx = jnp.concatenate([cat_a, cat_b, bag], axis=1)
    return fused_forward(params, cont, idx)


# ---------------------------------------------------------------------------
if __name__ == "__main__":
    params = init_params(CONFIG)

    key = jax.random.PRNGKey(0)
    k_cont, k_a, k_b, k_bag = jax.random.split(key, 4)
    B, L = 8, 5
    cont = jax.random.normal(k_cont, (B, CONFIG["num_continuous_features"]), jnp.float32)
    cat_a = jax.random.randint(k_a, (B,), 0, CONFIG["num_embeddings"][0], jnp.int32)
    cat_b = jax.random.randint(k_b, (B,), 0, CONFIG["num_embeddings"][1], jnp.int32)
    bag_c = jax.random.randint(k_bag, (B, L), 0, CONFIG["num_embeddings"][2], jnp.int32)

    fwd = jax.jit(functools.partial(
        quantile_net_forward, num_embeddings=tuple(CONFIG["num_embeddings"])))
    out = fwd(params, cont, cat_a, cat_b, bag_c)
    jax.block_until_ready(out)

    expected = (B, len(CONFIG["quantiles"]) + 1)
    assert out.shape == expected, (out.shape, expected)
    assert out.dtype == jnp.float32
    print("KERNEL_OK")
</pallas_src>

<mosaic_0001>
module attributes {stable_mosaic.version = 11 : i64} {
  func.func @_fused_forward_kernel(%arg0: i32, %arg1: memref<8x6xf32, #tpu.memory_space<vmem>>, %arg2: memref<8x7xi32, #tpu.memory_space<vmem>>, %arg3: memref<6x64xbf16, #tpu.memory_space<vmem>>, %arg4: memref<38x64xbf16, #tpu.memory_space<vmem>>, %arg5: memref<64x32xbf16, #tpu.memory_space<vmem>>, %arg6: memref<32x32xbf16, #tpu.memory_space<vmem>>, %arg7: memref<32x16xbf16, #tpu.memory_space<vmem>>, %arg8: memref<16x8xbf16, #tpu.memory_space<vmem>>, %arg9: memref<5x64xf32, #tpu.memory_space<vmem>>, %arg10: memref<8x8xf32, #tpu.memory_space<vmem>>) attributes {dimension_semantics = [#tpu.dimension_semantics<parallel>], iteration_bounds = array<i64: 1>, scalar_prefetch = 0 : i64, scratch_operands = 0 : i64, tpu.core_type = #tpu.core_type<tc>, window_params = [{transform_indices = @transform_0, window_bounds = array<i64: 8, 6>}, {transform_indices = @transform_1, window_bounds = array<i64: 8, 7>}, {pipeline_mode = #tpu.pipeline_mode<synchronous>, transform_indices = @transform_2, window_bounds = array<i64: 6, 64>}, {pipeline_mode = #tpu.pipeline_mode<synchronous>, transform_indices = @transform_3, window_bounds = array<i64: 38, 64>}, {pipeline_mode = #tpu.pipeline_mode<synchronous>, transform_indices = @transform_4, window_bounds = array<i64: 64, 32>}, {pipeline_mode = #tpu.pipeline_mode<synchronous>, transform_indices = @transform_5, window_bounds = array<i64: 32, 32>}, {pipeline_mode = #tpu.pipeline_mode<synchronous>, transform_indices = @transform_6, window_bounds = array<i64: 32, 16>}, {pipeline_mode = #tpu.pipeline_mode<synchronous>, transform_indices = @transform_7, window_bounds = array<i64: 16, 8>}, {pipeline_mode = #tpu.pipeline_mode<synchronous>, transform_indices = @transform_8, window_bounds = array<i64: 5, 64>}, {transform_indices = @transform_9, window_bounds = array<i64: 8, 8>}]} {
    %c0 = arith.constant 0 : index
    %c0_0 = arith.constant 0 : index
    %0 = vector.load %arg2[%c0, %c0_0] : memref<8x7xi32, #tpu.memory_space<vmem>>, vector<8x7xi32>
    %1 = tpu.iota {dimensions = array<i32: 1>} : vector<8x38xi32>
    %2 = vector.extract_strided_slice %0 {offsets = [0, 0], sizes = [8, 1], strides = [1, 1]} : vector<8x7xi32> to vector<8x1xi32>
    %3 = vector.broadcast %2 : vector<8x1xi32> to vector<8x38xi32>
    %4 = arith.cmpi eq, %1, %3 : vector<8x38xi32>
    %5 = vector.extract_strided_slice %0 {offsets = [0, 1], sizes = [8, 1], strides = [1, 1]} : vector<8x7xi32> to vector<8x1xi32>
    %6 = vector.broadcast %5 : vector<8x1xi32> to vector<8x38xi32>
    %7 = arith.cmpi eq, %1, %6 : vector<8x38xi32>
    %8 = arith.ori %4, %7 : vector<8x38xi1>
    %9 = arith.extui %8 : vector<8x38xi1> to vector<8x38xi32>
    %10 = arith.sitofp %9 : vector<8x38xi32> to vector<8x38xf32>
    %cst = arith.constant 0.000000e+00 : f32
    %11 = vector.broadcast %cst : f32 to vector<8x38xf32>
    %cst_1 = arith.constant 0.000000e+00 : f32
    %12 = vector.broadcast %cst_1 : f32 to vector<8x1xf32>
    %13 = vector.extract_strided_slice %0 {offsets = [0, 2], sizes = [8, 1], strides = [1, 1]} : vector<8x7xi32> to vector<8x1xi32>
    %14 = vector.broadcast %13 : vector<8x1xi32> to vector<8x38xi32>
    %15 = arith.cmpi eq, %1, %14 : vector<8x38xi32>
    %16 = arith.extui %15 : vector<8x38xi1> to vector<8x38xi32>
    %17 = arith.sitofp %16 : vector<8x38xi32> to vector<8x38xf32>
    %18 = arith.addf %11, %17 : vector<8x38xf32>
    %c0_i32 = arith.constant 0 : i32
    %19 = vector.broadcast %c0_i32 : i32 to vector<8x1xi32>
    %20 = arith.cmpi sge, %13, %19 : vector<8x1xi32>
    %21 = arith.extui %20 : vector<8x1xi1> to vector<8x1xi32>
    %22 = arith.sitofp %21 : vector<8x1xi32> to vector<8x1xf32>
    %23 = arith.addf %12, %22 : vector<8x1xf32>
    %24 = vector.extract_strided_slice %0 {offsets = [0, 3], sizes = [8, 1], strides = [1, 1]} : vector<8x7xi32> to vector<8x1xi32>
    %25 = vector.broadcast %24 : vector<8x1xi32> to vector<8x38xi32>
    %26 = arith.cmpi eq, %1, %25 : vector<8x38xi32>
    %27 = arith.extui %26 : vector<8x38xi1> to vector<8x38xi32>
    %28 = arith.sitofp %27 : vector<8x38xi32> to vector<8x38xf32>
    %29 = arith.addf %18, %28 : vector<8x38xf32>
    %c0_i32_2 = arith.constant 0 : i32
    %30 = vector.broadcast %c0_i32_2 : i32 to vector<8x1xi32>
    %31 = arith.cmpi sge, %24, %30 : vector<8x1xi32>
    %32 = arith.extui %31 : vector<8x1xi1> to vector<8x1xi32>
    %33 = arith.sitofp %32 : vector<8x1xi32> to vector<8x1xf32>
    %34 = arith.addf %23, %33 : vector<8x1xf32>
    %35 = vector.extract_strided_slice %0 {offsets = [0, 4], sizes = [8, 1], strides = [1, 1]} : vector<8x7xi32> to vector<8x1xi32>
    %36 = vector.broadcast %35 : vector<8x1xi32> to vector<8x38xi32>
    %37 = arith.cmpi eq, %1, %36 : vector<8x38xi32>
    %38 = arith.extui %37 : vector<8x38xi1> to vector<8x38xi32>
    %39 = arith.sitofp %38 : vector<8x38xi32> to vector<8x38xf32>
    %40 = arith.addf %29, %39 : vector<8x38xf32>
    %c0_i32_3 = arith.constant 0 : i32
    %41 = vector.broadcast %c0_i32_3 : i32 to vector<8x1xi32>
    %42 = arith.cmpi sge, %35, %41 : vector<8x1xi32>
    %43 = arith.extui %42 : vector<8x1xi1> to vector<8x1xi32>
    %44 = arith.sitofp %43 : vector<8x1xi32> to vector<8x1xf32>
    %45 = arith.addf %34, %44 : vector<8x1xf32>
    %46 = vector.extract_strided_slice %0 {offsets = [0, 5], sizes = [8, 1], strides = [1, 1]} : vector<8x7xi32> to vector<8x1xi32>
    %47 = vector.broadcast %46 : vector<8x1xi32> to vector<8x38xi32>
    %48 = arith.cmpi eq, %1, %47 : vector<8x38xi32>
    %49 = arith.extui %48 : vector<8x38xi1> to vector<8x38xi32>
    %50 = arith.sitofp %49 : vector<8x38xi32> to vector<8x38xf32>
    %51 = arith.addf %40, %50 : vector<8x38xf32>
    %c0_i32_4 = arith.constant 0 : i32
    %52 = vector.broadcast %c0_i32_4 : i32 to vector<8x1xi32>
    %53 = arith.cmpi sge, %46, %52 : vector<8x1xi32>
    %54 = arith.extui %53 : vector<8x1xi1> to vector<8x1xi32>
    %55 = arith.sitofp %54 : vector<8x1xi32> to vector<8x1xf32>
    %56 = arith.addf %45, %55 : vector<8x1xf32>
    %57 = vector.extract_strided_slice %0 {offsets = [0, 6], sizes = [8, 1], strides = [1, 1]} : vector<8x7xi32> to vector<8x1xi32>
    %58 = vector.broadcast %57 : vector<8x1xi32> to vector<8x38xi32>
    %59 = arith.cmpi eq, %1, %58 : vector<8x38xi32>
    %60 = arith.extui %59 : vector<8x38xi1> to vector<8x38xi32>
    %61 = arith.sitofp %60 : vector<8x38xi32> to vector<8x38xf32>
    %62 = arith.addf %51, %61 : vector<8x38xf32>
    %c0_i32_5 = arith.constant 0 : i32
    %63 = vector.broadcast %c0_i32_5 : i32 to vector<8x1xi32>
    %64 = arith.cmpi sge, %57, %63 : vector<8x1xi32>
    %65 = arith.extui %64 : vector<8x1xi1> to vector<8x1xi32>
    %66 = arith.sitofp %65 : vector<8x1xi32> to vector<8x1xf32>
    %67 = arith.addf %56, %66 : vector<8x1xf32>
    %cst_6 = arith.constant 0.000000e+00 : f32
    %68 = vector.broadcast %cst_6 : f32 to vector<8x1xf32>
    %69 = arith.cmpf ogt, %67, %68 : vector<8x1xf32>
    %cst_7 = arith.constant 1.000000e+00 : f32
    %70 = vector.broadcast %cst_7 : f32 to vector<8x1xf32>
    %71 = arith.maximumf %67, %70 : vector<8x1xf32>
    %cst_8 = arith.constant 1.000000e+00 : f32
    %72 = vector.broadcast %cst_8 : f32 to vector<8x1xf32>
    %73 = arith.divf %72, %71 : vector<8x1xf32>
    %cst_9 = arith.constant 0.000000e+00 : f32
    %74 = vector.broadcast %cst_9 : f32 to vector<8x1xf32>
    %75 = arith.select %69, %73, %74 : vector<8x1xi1>, vector<8x1xf32>
    %76 = vector.broadcast %75 : vector<8x1xf32> to vector<8x38xf32>
    %77 = arith.mulf %62, %76 : vector<8x38xf32>
    %78 = arith.addf %10, %77 : vector<8x38xf32>
    %79 = arith.truncf %78 : vector<8x38xf32> to vector<8x38xbf16>
    %c0_10 = arith.constant 0 : index
    %c0_11 = arith.constant 0 : index
    %80 = vector.load %arg1[%c0_10, %c0_11] : memref<8x6xf32, #tpu.memory_space<vmem>>, vector<8x6xf32>
    %81 = arith.truncf %80 : vector<8x6xf32> to vector<8x6xbf16>
    %c0_12 = arith.constant 0 : index
    %c0_13 = arith.constant 0 : index
    %82 = vector.load %arg3[%c0_12, %c0_13] : memref<6x64xbf16, #tpu.memory_space<vmem>>, vector<6x64xbf16>
    %cst_14 = arith.constant dense<0.000000e+00> : vector<8x64xf32>
    %83 = tpu.matmul %81, %82, %cst_14 {dimension_numbers = #tpu.dot_dimension_numbers<[1], [0], [0], [1], [0, 0, 1, 1], [], []>} : vector<8x6xbf16>, vector<6x64xbf16>, vector<8x64xf32> -> vector<8x64xf32>
    %c0_15 = arith.constant 0 : index
    %c0_16 = arith.constant 0 : index
    %84 = vector.load %arg4[%c0_15, %c0_16] : memref<38x64xbf16, #tpu.memory_space<vmem>>, vector<38x64xbf16>
    %cst_17 = arith.constant dense<0.000000e+00> : vector<8x64xf32>
    %85 = tpu.matmul %79, %84, %cst_17 {dimension_numbers = #tpu.dot_dimension_numbers<[1], [0], [0], [1], [0, 0, 1, 1], [], []>} : vector<8x38xbf16>, vector<38x64xbf16>, vector<8x64xf32> -> vector<8x64xf32>
    %86 = arith.addf %83, %85 : vector<8x64xf32>
    %c0_18 = arith.constant 0 : index
    %c0_19 = arith.constant 0 : index
    %87 = vector.load %arg9[%c0_18, %c0_19] : memref<5x64xf32, #tpu.memory_space<vmem>>, vector<1x64xf32>
    %88 = vector.broadcast %87 : vector<1x64xf32> to vector<8x64xf32>
    %89 = arith.addf %86, %88 : vector<8x64xf32>
    %cst_20 = arith.constant 0.000000e+00 : f32
    %90 = vector.broadcast %cst_20 : f32 to vector<8x64xf32>
    %91 = arith.maximumf %89, %90 : vector<8x64xf32>
    %92 = arith.truncf %91 : vector<8x64xf32> to vector<8x64xbf16>
    %c0_21 = arith.constant 0 : index
    %c0_22 = arith.constant 0 : index
    %93 = vector.load %arg5[%c0_21, %c0_22] : memref<64x32xbf16, #tpu.memory_space<vmem>>, vector<64x32xbf16>
    %cst_23 = arith.constant dense<0.000000e+00> : vector<8x32xf32>
    %94 = tpu.matmul %92, %93, %cst_23 {dimension_numbers = #tpu.dot_dimension_numbers<[1], [0], [0], [1], [0, 0, 1, 1], [], []>} : vector<8x64xbf16>, vector<64x32xbf16>, vector<8x32xf32> -> vector<8x32xf32>
    %c1 = arith.constant 1 : index
    %c0_24 = arith.constant 0 : index
    %95 = vector.load %arg9[%c1, %c0_24] : memref<5x64xf32, #tpu.memory_space<vmem>>, vector<1x32xf32>
    %96 = vector.broadcast %95 : vector<1x32xf32> to vector<8x32xf32>
    %97 = arith.addf %94, %96 : vector<8x32xf32>
    %cst_25 = arith.constant 0.000000e+00 : f32
    %98 = vector.broadcast %cst_25 : f32 to vector<8x32xf32>
    %99 = arith.maximumf %97, %98 : vector<8x32xf32>
    %100 = arith.truncf %99 : vector<8x32xf32> to vector<8x32xbf16>
    %c0_26 = arith.constant 0 : index
    %c0_27 = arith.constant 0 : index
    %101 = vector.load %arg6[%c0_26, %c0_27] : memref<32x32xbf16, #tpu.memory_space<vmem>>, vector<32x32xbf16>
    %cst_28 = arith.constant dense<0.000000e+00> : vector<8x32xf32>
    %102 = tpu.matmul %100, %101, %cst_28 {dimension_numbers = #tpu.dot_dimension_numbers<[1], [0], [0], [1], [0, 0, 1, 1], [], []>} : vector<8x32xbf16>, vector<32x32xbf16>, vector<8x32xf32> -> vector<8x32xf32>
    %c2 = arith.constant 2 : index
    %c0_29 = arith.constant 0 : index
    %103 = vector.load %arg9[%c2, %c0_29] : memref<5x64xf32, #tpu.memory_space<vmem>>, vector<1x32xf32>
    %104 = vector.broadcast %103 : vector<1x32xf32> to vector<8x32xf32>
    %105 = arith.addf %102, %104 : vector<8x32xf32>
    %cst_30 = arith.constant 0.000000e+00 : f32
    %106 = vector.broadcast %cst_30 : f32 to vector<8x32xf32>
    %107 = arith.maximumf %105, %106 : vector<8x32xf32>
    %108 = arith.truncf %107 : vector<8x32xf32> to vector<8x32xbf16>
    %c0_31 = arith.constant 0 : index
    %c0_32 = arith.constant 0 : index
    %109 = vector.load %arg7[%c0_31, %c0_32] : memref<32x16xbf16, #tpu.memory_space<vmem>>, vector<32x16xbf16>
    %cst_33 = arith.constant dense<0.000000e+00> : vector<8x16xf32>
    %110 = tpu.matmul %108, %109, %cst_33 {dimension_numbers = #tpu.dot_dimension_numbers<[1], [0], [0], [1], [0, 0, 1, 1], [], []>} : vector<8x32xbf16>, vector<32x16xbf16>, vector<8x16xf32> -> vector<8x16xf32>
    %c3 = arith.constant 3 : index
    %c0_34 = arith.constant 0 : index
    %111 = vector.load %arg9[%c3, %c0_34] : memref<5x64xf32, #tpu.memory_space<vmem>>, vector<1x16xf32>
    %112 = vector.broadcast %111 : vector<1x16xf32> to vector<8x16xf32>
    %113 = arith.addf %110, %112 : vector<8x16xf32>
    %cst_35 = arith.constant 0.000000e+00 : f32
    %114 = vector.broadcast %cst_35 : f32 to vector<8x16xf32>
    %115 = arith.maximumf %113, %114 : vector<8x16xf32>
    %116 = arith.truncf %115 : vector<8x16xf32> to vector<8x16xbf16>
    %c0_36 = arith.constant 0 : index
    %c0_37 = arith.constant 0 : index
    %117 = vector.load %arg8[%c0_36, %c0_37] : memref<16x8xbf16, #tpu.memory_space<vmem>>, vector<16x8xbf16>
    %cst_38 = arith.constant dense<0.000000e+00> : vector<8x8xf32>
    %118 = tpu.matmul %116, %117, %cst_38 {dimension_numbers = #tpu.dot_dimension_numbers<[1], [0], [0], [1], [0, 0, 1, 1], [], []>} : vector<8x16xbf16>, vector<16x8xbf16>, vector<8x8xf32> -> vector<8x8xf32>
    %c4 = arith.constant 4 : index
    %c0_39 = arith.constant 0 : index
    %119 = vector.load %arg9[%c4, %c0_39] : memref<5x64xf32, #tpu.memory_space<vmem>>, vector<1x8xf32>
    %120 = vector.broadcast %119 : vector<1x8xf32> to vector<8x8xf32>
    %121 = arith.addf %118, %120 : vector<8x8xf32>
    %c0_40 = arith.constant 0 : index
    %c0_41 = arith.constant 0 : index
    %122 = vector.load %arg10[%c0_40, %c0_41] : memref<8x8xf32, #tpu.memory_space<vmem>>, vector<8x8xf32>
    tpu.vector_store %arg10[%c0_40, %c0_41], %121 {strides = array<i32>} : memref<8x8xf32, #tpu.memory_space<vmem>>, vector<8x8xf32>,
    return
  }
  func.func @transform_0(%arg0: i32) -> (i32, i32) {
    %c0_i32 = arith.constant 0 : i32
    %c0_i32_0 = arith.constant 0 : i32
    return %arg0, %c0_i32 : i32, i32
  }
  func.func @transform_1(%arg0: i32) -> (i32, i32) {
    %c0_i32 = arith.constant 0 : i32
    %c0_i32_0 = arith.constant 0 : i32
    return %arg0, %c0_i32 : i32, i32
  }
  func.func @transform_2(%arg0: i32) -> (i32, i32) {
    %c0_i32 = arith.constant 0 : i32
    %c0_i32_0 = arith.constant 0 : i32
    %c0_i32_1 = arith.constant 0 : i32
    return %c0_i32, %c0_i32_0 : i32, i32
  }
  func.func @transform_3(%arg0: i32) -> (i32, i32) {
    %c0_i32 = arith.constant 0 : i32
    %c0_i32_0 = arith.constant 0 : i32
    %c0_i32_1 = arith.constant 0 : i32
    return %c0_i32, %c0_i32_0 : i32, i32
  }
  func.func @transform_4(%arg0: i32) -> (i32, i32) {
    %c0_i32 = arith.constant 0 : i32
    %c0_i32_0 = arith.constant 0 : i32
    %c0_i32_1 = arith.constant 0 : i32
    return %c0_i32, %c0_i32_0 : i32, i32
  }
  func.func @transform_5(%arg0: i32) -> (i32, i32) {
    %c0_i32 = arith.constant 0 : i32
    %c0_i32_0 = arith.constant 0 : i32
    %c0_i32_1 = arith.constant 0 : i32
    return %c0_i32, %c0_i32_0 : i32, i32
  }
  func.func @transform_6(%arg0: i32) -> (i32, i32) {
    %c0_i32 = arith.constant 0 : i32
    %c0_i32_0 = arith.constant 0 : i32
    %c0_i32_1 = arith.constant 0 : i32
    return %c0_i32, %c0_i32_0 : i32, i32
  }
  func.func @transform_7(%arg0: i32) -> (i32, i32) {
    %c0_i32 = arith.constant 0 : i32
    %c0_i32_0 = arith.constant 0 : i32
    %c0_i32_1 = arith.constant 0 : i32
    return %c0_i32, %c0_i32_0 : i32, i32
  }
  func.func @transform_8(%arg0: i32) -> (i32, i32) {
    %c0_i32 = arith.constant 0 : i32
    %c0_i32_0 = arith.constant 0 : i32
    %c0_i32_1 = arith.constant 0 : i32
    return %c0_i32, %c0_i32_0 : i32, i32
  }
  func.func @transform_9(%arg0: i32) -> (i32, i32) {
    %c0_i32 = arith.constant 0 : i32
    %c0_i32_0 = arith.constant 0 : i32
    return %arg0, %c0_i32 : i32, i32
  }
}

</mosaic_0001>

<bundles_post_ra>
// kernel: quantile_net_forward.1
= control target key start
LH: loop header
LB: loop body
LE: loop exit
PB: predicated region body
PF: predicated region fallthrough
CT: control target
= control target key end

     0   :  { %v452_v1 = vmov 0.0   ;;  %s453_s11 = smov 127   ;;  %s454_s12 = smov 125   ;;  %v457_v3 = vmov 4   ;;  %v458_v4 = vmov 5   ;;  %v459_v5 = vmov 2   ;;  %s584_s1 = inlined_call_operand.vmem [shape: s32[8,7], index: 1, kind: input, shape index: {}]   ;;  %s585_s3 = inlined_call_operand.vmem [shape: bf16[38,64], index: 3, kind: input, shape index: {}]   ;;  %s586_s2 = inlined_call_operand.vmem [shape: bf16[6,64], index: 2, kind: input, shape index: {}]   ;;  %s587_s0 = inlined_call_operand.vmem [shape: f32[8,6], index: 0, kind: input, shape index: {}]   ;;  %s588_s8 = inlined_call_operand.vmem [shape: f32[5,64], index: 8, kind: input, shape index: {}]   ;;  %s589_s4 = inlined_call_operand.vmem [shape: bf16[64,32], index: 4, kind: input, shape index: {}]   ;;  %s590_s5 = inlined_call_operand.vmem [shape: bf16[32,32], index: 5, kind: input, shape index: {}]   ;;  %s591_s6 = inlined_call_operand.vmem [shape: bf16[32,16], index: 6, kind: input, shape index: {}]   ;;  %s592_s7 = inlined_call_operand.vmem [shape: bf16[16,8], index: 7, kind: input, shape index: {}]   ;;  %s593_s9 = inlined_call_operand.vmem [shape: f32[8,8], index: 9, kind: output, shape index: {}]  }
   0x1   :  { %v33_v0 = vld [vmem:[%s584_s1] sm:$0xff]  ;;  %s455_s13 = smov 126   ;;  %s456_s14 = smov 124   ;;  %439 = vset.pattern.permute.xlu0 %v457_v3  ;;  %440 = vset.pattern.permute.xlu1 %v458_v4  ;;  %v460_v6 = vmov 0   ;;  %v461_v7 = vmov 3   ;;  %v462_v10 = vmov 6   ;;  %v34_v41 = vlaneseq }
   0x2   :  { %vm54_vm0 = vcmp.ge.s32.totalorder %v33_v0, 0  ;;  %437 = vset.pattern.permute.xlu2 %v459_v5  ;;  %v463_v17 = vmov 1   ;;  %v136_v30 = vld [vmem:[%s585_s3 + $0x10] sm:$0x7]  ;;  %vm156_vm6 = vcmask 1042432   ;;  %v129_v36 = vld [vmem:[%s587_s0] sm:$0xff] }
   0x3   :  { %v359_v2 = vsel %vm54_vm0, 1.0, %v452_v1  ;;  %48 = vperm.xlu2 %437, %v33_v0   ;;  %v131_v31 = vld [vmem:[%s586_s2] sm:$0x7]  ;;  %v146_v32 = vunpack.c.l.b16 %v136_v30  ;;  %vm173_vm7 = vcmask 48128   ;;  %v415_v37 = vld [vmem:[%s585_s3 + $0x8] sm:$0xff]  ;;  %v130_v38 = vpack.c.bf16 %v129_v36, %v129_v36  ;;  %v419_v63 = vld [vmem:[%s589_s4 + $0x18] sm:$0xff] }
   0x4   :  { %66 = vrot.lane.b32.xlu0 %v359_v2, %s453_s11  ;;  %88 = vrot.lane.b32.xlu1 %v359_v2, %s454_s12  ;;  %v178_v33 = vsel %vm156_vm6, %v131_v31, 0  ;;  %v414_v40 = vld [vmem:[%s585_s3] sm:$0xff]  ;;  %v35_v43 = vand.u32 127, %v34_v41  ;;  %vm152_vm0 = vcmask 310272  }
   0x5   :  { %187 = vmatpush.bf16.msra.mxu1 %v178_v33  ;;  %v149_v34 = vpack.c.b16 %v146_v32, %v146_v32  ;;  %240 = vmatpush.bf16.msra.mxu2 %v419_v63  ;;  %v416_v4 = vld [vmem:[%s589_s4] sm:$0xff] }
   0x7   :  { %v158_v35 = vsel %vm156_vm6, %v149_v34, 0 }
   0x8   :  { %165 = vmatpush.bf16.msra.mxu0 %v158_v35  ;;  %373 = vmatmul.msk.bf16.vlgmr.msra.gmra.mxu1 %vm173_vm7, %v130_v38  ;;  %v449_v35 = vld [vmem:[%s588_s8 + $0x4] ss:$0 sm:$0xff] }
   0xb   :  { %438 = vset.pattern.permute.xlu2 %v461_v7 }
   0xc   :  { %77 = vrot.lane.b32.xlu0 %v359_v2, %s455_s13  ;;  %99 = vrot.lane.b32.xlu1 %v359_v2, %s456_s14 }
   0xd   :  { %59 = vperm.xlu2 %438, %v33_v0   ;;  %166 = vmatpush.bf16.msra.mxu0 %v415_v37 }
  0x11   :  { %167 = vmatpush.bf16.msra.mxu0 %v414_v40 }
  0x14   :  { %71 = vperm.xlu0 %439, %v33_v0   ;;  %82 = vperm.xlu1 %440, %v33_v0  }
  0x15   :  { %441 = vset.pattern.permute.xlu2 %v462_v10 }
  0x16   :  { %93 = vperm.xlu2 %441, %v33_v0  }
  0x1c   :  { %444 = vset.pattern.permute.xlu0 %v459_v5  ;;  %442 = vset.pattern.permute.xlu1 %v460_v6  ;;  %v445_v5 = vld [vmem:[%s588_s8] ss:$0 sm:$0xff] }
  0x1d   :  { %37 = vperm.xlu1 %442, %v33_v0  }
  0x1e   :  { %443 = vset.pattern.permute.xlu2 %v463_v17 }
  0x1f   :  { %41 = vperm.xlu2 %443, %v33_v0   ;;  %v418_v0 = vld [vmem:[%s589_s4 + $0x10] sm:$0xff] }
  0x20   :  { %241 = vmatpush.bf16.msra.mxu2 %v418_v0 }
  0x5d   :  { %v49_v39 = vpop.permute.xlu2 %48 }
  0x5e   :  { %vm50_vm8 = vcmp.eq.s32.totalorder %v35_v43, %v49_v39 }
  0x5f   :  { %v358_v47 = vsel %vm50_vm8, 1.0, %v452_v1 }
  0x67   :  { %v60_v42 = vpop.permute.xlu2 %59 }
  0x68   :  { %vm61_vm9 = vcmp.eq.s32.totalorder %v35_v43, %v60_v42 }
  0x69   :  { %v360_v48 = vsel %vm61_vm9, 1.0, %v452_v1 }
  0x6a   :  { %v64_v49 = vadd.f32 %v360_v48, %v358_v47 }
  0x70   :  { %v94_v46 = vpop.permute.xlu2 %93 }
  0x71   :  { %vm95_vm12 = vcmp.eq.s32.totalorder %v35_v43, %v94_v46 }
  0x72   :  { %v363_v56 = vsel %vm95_vm12, 1.0, %v452_v1 }
  0x76   :  { %v67_v8 = vpop.permute.xlu0 %66  ;;  %v89_v9 = vpop.permute.xlu1 %88 }
  0x77   :  { %v69_v11 = vadd.f32 %v359_v2, %v67_v8 }
  0x79   :  { %v42_v52 = vpop.permute.xlu2 %41 }
  0x7a   :  { %vm43_vm13 = vcmp.eq.s32.totalorder %v35_v43, %v42_v52 }
  0x7e   :  { %v78_v12 = vpop.permute.xlu0 %77  ;;  %v100_v14 = vpop.permute.xlu1 %99 }
  0x7f   :  { %v80_v13 = vadd.f32 %v78_v12, %v69_v11  ;;  %v421_v12 = vld [vmem:[%s590_s5 + $0x8] sm:$0xff] }
  0x80   :  { %279 = vmatpush.bf16.msra.mxu3 %v421_v12 }
  0x81   :  { %v91_v15 = vadd.f32 %v89_v9, %v80_v13  ;;  %v420_v13 = vld [vmem:[%s590_s5] sm:$0xff] }
  0x83   :  { %v102_v16 = vadd.f32 %v100_v14, %v91_v15  ;;  %v423_v14 = vld [vmem:[%s591_s6 + $0x8] sm:$0xff]  ;;  %v422_v15 = vld [vmem:[%s591_s6] sm:$0xff] }
  0x84   :  { %280 = vmatpush.bf16.msra.mxu3 %v420_v13  ;;  %315 = vmatpush.bf16.msrb.mxu1 %v423_v14 }
  0x85   :  { %v104_v18 = vmax.f32 %v102_v16, 1.0  ;;  %vm103_vm5 = vcmp.gt.f32.partialorder %v102_v16, 0.0  ;;  %v189_v2 = vpop.f32.mrf.mxu1  ;;  %v446_v16 = vld [vmem:[%s588_s8 + $0x1] ss:$0 sm:$0xff] }
  0x86   :  { %v72_v44 = vpop.permute.xlu0 %71  ;;  %v83_v45 = vpop.permute.xlu1 %82 }
  0x87   :  { %450 = vrcp.f32 %v104_v18  ;;  %v116_v22 = vand.u32 2147483648, %v104_v18  ;;  %v114_v24 = vand.u32 2147483647, %v104_v18  ;;  %vm110_vm2 = vweird.f32 %v104_v18 }
  0x88   :  { %vm73_vm10 = vcmp.eq.s32.totalorder %v35_v43, %v72_v44  ;;  %vm84_vm11 = vcmp.eq.s32.totalorder %v35_v43, %v83_v45  ;;  %316 = vmatpush.bf16.msrb.mxu1 %v422_v15 }
  0x89   :  { %v117_v26 = vor.u32 1.1754944e-38, %v116_v22  ;;  %vm115_vm4 = vcmp.eq.f32.partialorder %v114_v24, 8.507059e+37  ;;  %v361_v50 = vsel %vm73_vm10, 1.0, %v452_v1  ;;  %v362_v54 = vsel %vm84_vm11, 1.0, %v452_v1  ;;  %v424_v22 = vld [vmem:[%s592_s7] sm:$0xff] }
  0x8a   :  { %v76_v51 = vadd.f32 %v361_v50, %v64_v49  ;;  %345 = vmatpush.bf16.msrb.mxu3 %v424_v22 }
  0x8c   :  { %v87_v55 = vadd.f32 %v362_v54, %v76_v51 }
  0x8d   :  { %v451_v19 = vpop.eup %450  ;;  %v191_v3 = vpop.f32.mrf.mxu1 }
  0x8e   :  { %v106_v20 = vmul.f32 %v451_v19, %v104_v18  ;;  %vm111_vm1 = vweird.f32 %v451_v19  ;;  %v98_v57 = vadd.f32 %v363_v56, %v87_v55 }
  0x8f   :  { %vm112_vm3 = vmor %vm110_vm2, %vm111_vm1  ;;  %v38_v53 = vpop.permute.xlu1 %37  ;;  %vm232_vm1 = vcmask 523264   ;;  %vm269_vm2 = vcmask 261120  }
  0x90   :  { %v107_v21 = vsub.f32 1.0, %v106_v20  ;;  %vm39_vm14 = vcmp.eq.s32.totalorder %v35_v43, %v38_v53 }
  0x91   :  { %vm44_vm15 = vmor %vm39_vm14, %vm43_vm13 }
  0x92   :  { %v108_v23 = vmul.f32 %v451_v19, %v107_v21  ;;  %v357_v58 = vsel %vm44_vm15, 1.0, %v452_v1  ;;  %v417_v1 = vld [vmem:[%s589_s4 + $0x8] sm:$0xff] }
  0x93   :  { %242 = vmatpush.bf16.msra.mxu2 %v417_v1 }
  0x94   :  { %v109_v25 = vadd.f32 %v451_v19, %v108_v23  ;;  %v447_v23 = vld [vmem:[%s588_s8 + $0x2] ss:$0 sm:$0xff] }
  0x96   :  { %v113_v27 = vsel %vm112_vm3, %v451_v19, %v109_v25  ;;  %vm334_vm3 = vcmask 130048  }
  0x97   :  { %v118_v28 = vsel %vm115_vm4, %v117_v26, %v113_v27  ;;  %243 = vmatpush.bf16.msra.mxu2 %v416_v4  ;;  %vm351_vm4 = vcmask 64512  }
  0x98   :  { %v120_v29 = vsel %vm103_vm5, %v118_v28, 0.0 }
  0x99   :  { %123 = vperm.xlu0 %444, %v120_v29   ;;  %v448_v29 = vld [vmem:[%s588_s8 + $0x3] ss:$0 sm:$0xff] }
 0x10b   :  { %v124_v59 = vpop.permute.xlu0 %123 }
 0x10c   :  { %v126_v60 = vmul.f32 %v124_v59, %v98_v57 }
 0x10e   :  { %v127_v61 = vadd.f32 %v357_v58, %v126_v60 }
 0x110   :  { %v128_v62 = vpack.c.bf16 %v127_v61, %v127_v61 }
 0x112   :  { %372 = vmatmul.msk.bf16.vlgmr.msra.gmra.mxu0 %vm152_vm0, %v128_v62 }
 0x18f   :  { %v169_v6 = vpop.f32.mrf.mxu0 }
 0x190   :  { %v190_v7 = vadd.f32 %v189_v2, %v169_v6 }
 0x192   :  { %v195_v8 = vadd.f32 %v445_v5, %v190_v7 }
 0x194   :  { %v196_v9 = vmax.f32 %v195_v8, 0.0 }
 0x196   :  { %v197_v10 = vpack.c.bf16 %v196_v9, %v196_v9 }
 0x197   :  { %v171_v11 = vpop.f32.mrf.mxu0 }
 0x198   :  { %390 = vmatmul.msk.bf16.vlgmr.msra.gmra.mxu2 %vm232_vm1, %v197_v10 }
 0x21b   :  { %v245_v17 = vpop.f32.mrf.mxu2 }
 0x21c   :  { %v246_v18 = vadd.f32 %v446_v16, %v245_v17 }
 0x21e   :  { %v249_v19 = vmax.f32 %v246_v18, 0.0 }
 0x220   :  { %v250_v20 = vpack.c.bf16 %v249_v19, %v249_v19 }
 0x222   :  { %399 = vmatmul.msk.bf16.vlgmr.msra.gmra.mxu3 %vm269_vm2, %v250_v20 }
 0x223   :  { %v247_v21 = vpop.f32.mrf.mxu2 }
 0x2a5   :  { %v282_v24 = vpop.f32.mrf.mxu3 }
 0x2a6   :  { %v283_v25 = vadd.f32 %v447_v23, %v282_v24 }
 0x2a8   :  { %v286_v26 = vmax.f32 %v283_v25, 0.0 }
 0x2aa   :  { %v287_v27 = vpack.c.bf16 %v286_v26, %v286_v26 }
 0x2ac   :  { %408 = vmatmul.msk.bf16.vlgmr.msrb.gmra.mxu1 %vm269_vm2, %v287_v27 }
 0x2ad   :  { %v284_v28 = vpop.f32.mrf.mxu3 }
 0x329   :  { %v318_v30 = vpop.f32.mrf.mxu1 }
 0x32a   :  { %v319_v31 = vadd.f32 %v448_v29, %v318_v30 }
 0x32c   :  { %v322_v32 = vmax.f32 %v319_v31, 0.0 }
 0x32e   :  { %v323_v33 = vpack.c.bf16 %v322_v32, %v322_v32 }
 0x330   :  { %413 = vmatmul.msk.bf16.vlgmr.msrb.gmra.mxu3 %vm334_vm3, %v323_v33 }
 0x331   :  { %v320_v34 = vpop.f32.mrf.mxu1 }
 0x3b3   :  { %v347_v36 = vpop.f32.mrf.mxu3 }
 0x3b4   :  { %v348_v37 = vadd.f32 %v449_v35, %v347_v36 }
 0x3b6   :  { %352 = vst.msk [vmem:[%s593_s9] sm:$0xff] %vm351_vm4, %v348_v37 }
 0x3bb   :  { %v349_v38 = vpop.f32.mrf.mxu3 }

</bundles_post_ra>
